<compile_context>
chip_gen: v5e
topology: v5e:2x2
jax: 0.10.0
libtpu: 0.0.40
codegen_flags: <defaults>
</compile_context>

<pallas_src>
import functools

import jax
import jax.numpy as jnp
from jax.experimental import pallas as pl
from jax.experimental.pallas import tpu as pltpu

_ROW_ALIGN = 8      # sublane alignment for packed-parameter row segments
_LANE = 128         # TPU lane width; batch tiles are multiples of this


def _round_up(x, m):
    return (x + m - 1) // m * m


# ----------------------------------------------------------------------------
# Kernel: one batch tile of the full MLP + reparameterized sample.
# ----------------------------------------------------------------------------
def _policy_kernel(n_layers, ob_dim, size, ac_dim, w_cols, compute_dtype,
                   obs_ref, eps_ref, w_ref, b_ref, out_ref):
    """Feature-major policy forward for one batch tile.

    obs_ref : [ob_dim, TB]     f32  observations (batch on the lane axis)
    eps_ref : [ac_dim, TB]     f32  N(0,1) noise for rsample()
    w_ref   : [W_ROWS, w_cols] f32  packed weights, each segment is [out, in]
    b_ref   : [B_ROWS, 1]      f32  packed biases + logstd
    out_ref : [ac_dim, TB]     f32  sampled actions
    """
    tb = obs_ref.shape[-1]
    h = obs_ref[...].astype(compute_dtype)                        # [ob_dim, TB]

    w_row = 0
    b_row = 0
    in_dim = ob_dim
    for _ in range(n_layers):
        if in_dim < w_cols:
            # Zero-pad activation rows up to the packed weight width; the
            # corresponding weight columns are zero, so this is exact and
            # avoids any lane slicing of the packed buffer.
            h = jnp.concatenate(
                [h, jnp.zeros((w_cols - in_dim, tb), compute_dtype)], axis=0)
        w = w_ref[pl.ds(w_row, size), :].astype(compute_dtype)    # [size, w_cols]
        b = b_ref[pl.ds(b_row, size), :]                          # [size, 1] f32
        z = jnp.dot(w, h, preferred_element_type=jnp.float32) + b
        h = jnp.tanh(z).astype(compute_dtype)                     # [size, TB]
        w_row += _round_up(size, _ROW_ALIGN)
        b_row += _round_up(size, _ROW_ALIGN)
        in_dim = size

    if in_dim < w_cols:
        h = jnp.concatenate(
            [h, jnp.zeros((w_cols - in_dim, tb), compute_dtype)], axis=0)
    w_out = w_ref[pl.ds(w_row, ac_dim), :].astype(compute_dtype)  # [ac_dim, w_cols]
    b_out = b_ref[pl.ds(b_row, ac_dim), :]                        # [ac_dim, 1]
    logstd = b_ref[pl.ds(b_row + _round_up(ac_dim, _ROW_ALIGN), ac_dim), :]

    loc = jnp.dot(w_out, h, preferred_element_type=jnp.float32) + b_out
    scale = jnp.exp(logstd)                                       # [ac_dim, 1]
    # Normal(loc, scale).rsample() == loc + scale * eps
    # TODO(synk): eps could be generated in-kernel via pltpu.prng_seed /
    # pltpu.prng_random_bits from a scalar seed to drop this DMA; kept as an
    # explicit input for parity with the rsample() reference.
    out_ref[...] = (loc + scale * eps_ref[...]).astype(out_ref.dtype)


# ----------------------------------------------------------------------------
# Parameter packing: two flat f32 buffers, sliced with static offsets in-kernel.
# ----------------------------------------------------------------------------
def _pack_params(hidden_params, out_params, logstd, ob_dim, size, ac_dim):
    n_layers = len(hidden_params)
    w_cols = max(ob_dim, size) if n_layers else ob_dim

    w_rows = n_layers * _round_up(size, _ROW_ALIGN) + _round_up(ac_dim, _ROW_ALIGN)
    b_rows = n_layers * _round_up(size, _ROW_ALIGN) + 2 * _round_up(ac_dim, _ROW_ALIGN)
    w_packed = jnp.zeros((w_rows, w_cols), jnp.float32)
    b_packed = jnp.zeros((b_rows, 1), jnp.float32)

    r = 0
    in_dim = ob_dim
    for w, bia in hidden_params:            # w: [in, size], bia: [1, size]
        w_packed = w_packed.at[r:r + size, :in_dim].set(w.T.astype(jnp.float32))
        b_packed = b_packed.at[r:r + size, 0].set(bia.reshape(-1).astype(jnp.float32))
        r += _round_up(size, _ROW_ALIGN)
        in_dim = size

    w_out, b_out = out_params               # [in_dim, ac_dim], [1, ac_dim]
    w_packed = w_packed.at[r:r + ac_dim, :in_dim].set(w_out.T.astype(jnp.float32))
    b_packed = b_packed.at[r:r + ac_dim, 0].set(b_out.reshape(-1).astype(jnp.float32))
    r_logstd = r + _round_up(ac_dim, _ROW_ALIGN)
    b_packed = b_packed.at[r_logstd:r_logstd + ac_dim, 0].set(
        logstd.reshape(-1).astype(jnp.float32))
    return w_packed, b_packed, w_cols


# ----------------------------------------------------------------------------
# Wrapper: batch-tiled grid, feature-major transposes, parameter residency.
# ----------------------------------------------------------------------------
def mlp_policy_sl_forward(obs, hidden_params, out_params, logstd, eps,
                          *, compute_dtype=jnp.bfloat16, batch_tile=256):
    """MLPPolicySL.forward (continuous): act = mean_net(obs) + exp(logstd)*eps.

    obs:            [B, ob_dim] float32
    hidden_params:  list of (W [in, size], b [1, size]) per hidden layer
    out_params:     (W_out [size, ac_dim], b_out [1, ac_dim])
    logstd:         [1, ac_dim]
    eps:            [B, ac_dim]  standard-normal noise for rsample()
    """
    n_layers = len(hidden_params)
    B, ob_dim = obs.shape
    size = hidden_params[0][0].shape[1] if n_layers else ob_dim
    ac_dim = out_params[0].shape[1]

    w_packed, b_packed, w_cols = _pack_params(
        hidden_params, out_params, logstd, ob_dim, size, ac_dim)

    # Batch goes on the 128-lane axis: transpose to feature-major and pad B
    # to a multiple of the lane tile (padded columns are sliced off below).
    batch_tile = _round_up(batch_tile, _LANE)
    tb = min(batch_tile, _round_up(B, _LANE))
    b_pad = _round_up(B, tb)
    obs_t = jnp.pad(obs.T.astype(jnp.float32), ((0, 0), (0, b_pad - B)))
    eps_t = jnp.pad(eps.T.astype(jnp.float32), ((0, 0), (0, b_pad - B)))

    kernel = functools.partial(
        _policy_kernel, n_layers, ob_dim, size, ac_dim, w_cols, compute_dtype)

    out_t = pl.pallas_call(
        kernel,
        out_shape=jax.ShapeDtypeStruct((ac_dim, b_pad), jnp.float32),
        grid=(b_pad // tb,),
        in_specs=[
            # Batch-tiled activations: new block per grid step (pipelined).
            pl.BlockSpec((ob_dim, tb), lambda i: (0, i)),
            pl.BlockSpec((ac_dim, tb), lambda i: (0, i)),
            # Packed parameters: constant block index -> VMEM-resident.
            pl.BlockSpec(w_packed.shape, lambda i: (0, 0)),
            pl.BlockSpec(b_packed.shape, lambda i: (0, 0)),
        ],
        out_specs=pl.BlockSpec((ac_dim, tb), lambda i: (0, i)),
        compiler_params=pltpu.CompilerParams(
            dimension_semantics=("parallel",),      # v7x: shard batch over 2 TCs
            vmem_limit_bytes=32 * 1024 * 1024,      # explicit; fits v7x's 64 MiB
        ),
    )(obs_t, eps_t, w_packed, b_packed)

    return out_t[:, :B].T                           # back to [B, ac_dim]


# ----------------------------------------------------------------------------
# Deterministic parameter init (PyTorch nn.Linear-style uniform bounds).
# ----------------------------------------------------------------------------
def init_params(key, ob_dim, ac_dim, n_layers, size):
    hidden_params = []
    in_dim = ob_dim
    for _ in range(n_layers):
        key, kw, kb = jax.random.split(key, 3)
        bound = 1.0 / jnp.sqrt(in_dim)
        w = jax.random.uniform(kw, (in_dim, size), jnp.float32, -bound, bound)
        bia = jax.random.uniform(kb, (1, size), jnp.float32, -bound, bound)
        hidden_params.append((w, bia))
        in_dim = size

    key, kw, kb = jax.random.split(key, 3)
    bound = 1.0 / jnp.sqrt(in_dim)
    w_out = jax.random.uniform(kw, (in_dim, ac_dim), jnp.float32, -bound, bound)
    b_out = jax.random.uniform(kb, (1, ac_dim), jnp.float32, -bound, bound)

    # logstd initialized to zeros, exactly like the PyTorch module.
    logstd = jnp.zeros((1, ac_dim), jnp.float32)
    return hidden_params, (w_out, b_out), logstd, key


def reference_forward(obs, hidden_params, out_params, logstd, eps):
    """Pure-f32 reference (HIGHEST precision so the reference itself is exact)."""
    h = obs
    for w, bia in hidden_params:
        h = jnp.tanh(jnp.dot(h, w, precision=jax.lax.Precision.HIGHEST) + bia)
    loc = jnp.dot(h, out_params[0], precision=jax.lax.Precision.HIGHEST) + out_params[1]
    return loc + jnp.exp(logstd) * eps


if __name__ == "__main__":
    # Small shapes consistent with the module's constructor.
    B, ob_dim, ac_dim, n_layers, size = 8, 16, 8, 2, 32

    key = jax.random.PRNGKey(0)
    hidden_params, out_params, logstd, key = init_params(
        key, ob_dim, ac_dim, n_layers, size)

    # Perturb logstd (a learnable parameter) so exp(logstd) * eps is actually
    # exercised; zeros-init would make the scale identically 1.
    key, k_ls, k_obs, k_eps = jax.random.split(key, 4)
    logstd = 0.1 * jax.random.normal(k_ls, (1, ac_dim), jnp.float32)

    obs = jax.random.normal(k_obs, (B, ob_dim), jnp.float32)
    eps = jax.random.normal(k_eps, (B, ac_dim), jnp.float32)  # rsample noise

    act = mlp_policy_sl_forward(obs, hidden_params, out_params, logstd, eps)
    act = jax.block_until_ready(act)

    ref = reference_forward(obs, hidden_params, out_params, logstd, eps)
    assert act.shape == (B, ac_dim)
    # bf16 MXU operands (f32 accumulation) -> relaxed tolerance vs the exact
    # f32 reference; observed error at these shapes is O(1e-3).
    assert jnp.allclose(act, ref, atol=5e-2, rtol=5e-2), (
        float(jnp.max(jnp.abs(act - ref))))

    print("KERNEL_OK")
</pallas_src>

<mosaic_0001>
module attributes {stable_mosaic.version = 11 : i64} {
  func.func @_policy_kernel(%arg0: i32, %arg1: memref<16x128xf32, #tpu.memory_space<vmem>>, %arg2: memref<8x128xf32, #tpu.memory_space<vmem>>, %arg3: memref<72x32xf32, #tpu.memory_space<vmem>>, %arg4: memref<80x1xf32, #tpu.memory_space<vmem>>, %arg5: memref<8x128xf32, #tpu.memory_space<vmem>>) attributes {dimension_semantics = [#tpu.dimension_semantics<parallel>], iteration_bounds = array<i64: 1>, scalar_prefetch = 0 : i64, scratch_operands = 0 : i64, tpu.core_type = #tpu.core_type<tc>, window_params = [{transform_indices = @transform_0, window_bounds = array<i64: 16, 128>}, {transform_indices = @transform_1, window_bounds = array<i64: 8, 128>}, {pipeline_mode = #tpu.pipeline_mode<synchronous>, transform_indices = @transform_2, window_bounds = array<i64: 72, 32>}, {pipeline_mode = #tpu.pipeline_mode<synchronous>, transform_indices = @transform_3, window_bounds = array<i64: 80, 1>}, {transform_indices = @transform_4, window_bounds = array<i64: 8, 128>}]} {
    %c0 = arith.constant 0 : index
    %c0_0 = arith.constant 0 : index
    %0 = vector.load %arg1[%c0, %c0_0] : memref<16x128xf32, #tpu.memory_space<vmem>>, vector<16x128xf32>
    %1 = arith.truncf %0 : vector<16x128xf32> to vector<16x128xbf16>
    %cst = arith.constant 0.000000e+00 : bf16
    %2 = vector.broadcast %cst : bf16 to vector<16x128xbf16>
    %3 = tpu.concatenate %1, %2 in 0 : vector<16x128xbf16>, vector<16x128xbf16> -> vector<32x128xbf16>
    %c0_1 = arith.constant 0 : index
    %c0_2 = arith.constant 0 : index
    %4 = vector.load %arg3[%c0_1, %c0_2] : memref<72x32xf32, #tpu.memory_space<vmem>>, vector<32x32xf32>
    %5 = arith.truncf %4 : vector<32x32xf32> to vector<32x32xbf16>
    %c0_3 = arith.constant 0 : index
    %c0_4 = arith.constant 0 : index
    %6 = vector.load %arg4[%c0_3, %c0_4] : memref<80x1xf32, #tpu.memory_space<vmem>>, vector<32x1xf32>
    %cst_5 = arith.constant dense<0.000000e+00> : vector<32x128xf32>
    %7 = tpu.matmul %5, %3, %cst_5 {dimension_numbers = #tpu.dot_dimension_numbers<[1], [0], [0], [1], [0, 0, 1, 1], [], []>} : vector<32x32xbf16>, vector<32x128xbf16>, vector<32x128xf32> -> vector<32x128xf32>
    %8 = vector.broadcast %6 : vector<32x1xf32> to vector<32x128xf32>
    %9 = arith.addf %7, %8 : vector<32x128xf32>
    %10 = math.tanh %9 : vector<32x128xf32>
    %11 = arith.truncf %10 : vector<32x128xf32> to vector<32x128xbf16>
    %c32 = arith.constant 32 : index
    %c0_6 = arith.constant 0 : index
    %12 = vector.load %arg3[%c32, %c0_6] : memref<72x32xf32, #tpu.memory_space<vmem>>, vector<32x32xf32>
    %13 = arith.truncf %12 : vector<32x32xf32> to vector<32x32xbf16>
    %c32_7 = arith.constant 32 : index
    %c0_8 = arith.constant 0 : index
    %14 = vector.load %arg4[%c32_7, %c0_8] : memref<80x1xf32, #tpu.memory_space<vmem>>, vector<32x1xf32>
    %cst_9 = arith.constant dense<0.000000e+00> : vector<32x128xf32>
    %15 = tpu.matmul %13, %11, %cst_9 {dimension_numbers = #tpu.dot_dimension_numbers<[1], [0], [0], [1], [0, 0, 1, 1], [], []>} : vector<32x32xbf16>, vector<32x128xbf16>, vector<32x128xf32> -> vector<32x128xf32>
    %16 = vector.broadcast %14 : vector<32x1xf32> to vector<32x128xf32>
    %17 = arith.addf %15, %16 : vector<32x128xf32>
    %18 = math.tanh %17 : vector<32x128xf32>
    %19 = arith.truncf %18 : vector<32x128xf32> to vector<32x128xbf16>
    %c64 = arith.constant 64 : index
    %c0_10 = arith.constant 0 : index
    %20 = vector.load %arg3[%c64, %c0_10] : memref<72x32xf32, #tpu.memory_space<vmem>>, vector<8x32xf32>
    %21 = arith.truncf %20 : vector<8x32xf32> to vector<8x32xbf16>
    %c64_11 = arith.constant 64 : index
    %c0_12 = arith.constant 0 : index
    %22 = vector.load %arg4[%c64_11, %c0_12] : memref<80x1xf32, #tpu.memory_space<vmem>>, vector<8x1xf32>
    %c72 = arith.constant 72 : index
    %c0_13 = arith.constant 0 : index
    %23 = vector.load %arg4[%c72, %c0_13] : memref<80x1xf32, #tpu.memory_space<vmem>>, vector<8x1xf32>
    %cst_14 = arith.constant dense<0.000000e+00> : vector<8x128xf32>
    %24 = tpu.matmul %21, %19, %cst_14 {dimension_numbers = #tpu.dot_dimension_numbers<[1], [0], [0], [1], [0, 0, 1, 1], [], []>} : vector<8x32xbf16>, vector<32x128xbf16>, vector<8x128xf32> -> vector<8x128xf32>
    %25 = vector.broadcast %22 : vector<8x1xf32> to vector<8x128xf32>
    %26 = arith.addf %24, %25 : vector<8x128xf32>
    %27 = math.exp %23 : vector<8x1xf32>
    %c0_15 = arith.constant 0 : index
    %c0_16 = arith.constant 0 : index
    %28 = vector.load %arg2[%c0_15, %c0_16] : memref<8x128xf32, #tpu.memory_space<vmem>>, vector<8x128xf32>
    %29 = vector.broadcast %27 : vector<8x1xf32> to vector<8x128xf32>
    %30 = arith.mulf %29, %28 : vector<8x128xf32>
    %31 = arith.addf %26, %30 : vector<8x128xf32>
    %c0_17 = arith.constant 0 : index
    %c0_18 = arith.constant 0 : index
    %32 = vector.load %arg5[%c0_17, %c0_18] : memref<8x128xf32, #tpu.memory_space<vmem>>, vector<8x128xf32>
    tpu.vector_store %arg5[%c0_17, %c0_18], %31 {strides = array<i32>} : memref<8x128xf32, #tpu.memory_space<vmem>>, vector<8x128xf32>,
    return
  }
  func.func @transform_0(%arg0: i32) -> (i32, i32) {
    %c0_i32 = arith.constant 0 : i32
    %c0_i32_0 = arith.constant 0 : i32
    return %c0_i32, %arg0 : i32, i32
  }
  func.func @transform_1(%arg0: i32) -> (i32, i32) {
    %c0_i32 = arith.constant 0 : i32
    %c0_i32_0 = arith.constant 0 : i32
    return %c0_i32, %arg0 : i32, i32
  }
  func.func @transform_2(%arg0: i32) -> (i32, i32) {
    %c0_i32 = arith.constant 0 : i32
    %c0_i32_0 = arith.constant 0 : i32
    %c0_i32_1 = arith.constant 0 : i32
    return %c0_i32, %c0_i32_0 : i32, i32
  }
  func.func @transform_3(%arg0: i32) -> (i32, i32) {
    %c0_i32 = arith.constant 0 : i32
    %c0_i32_0 = arith.constant 0 : i32
    %c0_i32_1 = arith.constant 0 : i32
    return %c0_i32, %c0_i32_0 : i32, i32
  }
  func.func @transform_4(%arg0: i32) -> (i32, i32) {
    %c0_i32 = arith.constant 0 : i32
    %c0_i32_0 = arith.constant 0 : i32
    return %c0_i32, %arg0 : i32, i32
  }
}

</mosaic_0001>

<bundles_post_ra>
// kernel: tpu_custom_call.1
= control target key start
LH: loop header
LB: loop body
LE: loop exit
PB: predicated region body
PF: predicated region fallthrough
CT: control target
= control target key end

     0   :  { %v260_v4 = vmov 0   ;;  %s361_s0 = inlined_call_operand.vmem [shape: f32[16,128], index: 0, kind: input, shape index: {}]   ;;  %s362_s1 = inlined_call_operand.vmem [shape: f32[8,128], index: 1, kind: input, shape index: {}]   ;;  %s363_s2 = inlined_call_operand.vmem [shape: f32[72,32], index: 2, kind: input, shape index: {}]   ;;  %s364_s3 = inlined_call_operand.vmem [shape: f32[80,1], index: 3, kind: input, shape index: {}]   ;;  %s365_s4 = inlined_call_operand.hbm [shape: f32[8,128], index: 4, kind: output, shape index: {}]  }
   0x1   :  { %v19_v0 = vld [vmem:[%s361_s0] sm:$0xff]  ;;  %v20_v1 = vld [vmem:[%s361_s0 + $0x8] sm:$0xff]  ;;  %213 = vset.pattern.permute.xlu0 %v260_v4  ;;  %v37_v5 = vld [vmem:[%s364_s3 + $0x10] sm:$0xff]  ;;  %214 = vset.pattern.permute.xlu1 %v260_v4 }
   0x2   :  { %v21_v2 = vpack.c.bf16 %v19_v0, %v19_v0  ;;  %v22_v3 = vpack.c.bf16 %v20_v1, %v20_v1  ;;  %51 = vperm.xlu0 %213, %v37_v5   ;;  %v35_v6 = vld [vmem:[%s364_s3] sm:$0xff]  ;;  %215 = vset.pattern.permute.xlu2 %v260_v4  ;;  %v30_v10 = vld [vmem:[%s363_s2 + $0x8] sm:$0xff] }
   0x3   :  { %v29_v9 = vld [vmem:[%s363_s2] sm:$0xff]  ;;  %41 = vperm.xlu1 %214, %v35_v6  }
   0x4   :  { %v25_v7 = vunpack.c.l.b16 %v21_v2  ;;  %v26_v8 = vunpack.c.l.b16 %v22_v3 }
   0x5   :  { %9 = vsyncpa [#allocation3], 0  ;;  %v33_v12 = vpack.c.bf16 %v30_v10, %v29_v9  ;;  %vm59_vm0 = vcmask 261120   ;;  %v38_v13 = vld [vmem:[%s364_s3 + $0x18] sm:$0xff]  ;;  %v36_v14 = vld [vmem:[%s364_s3 + $0x8] sm:$0xff]  ;;  %s261_s30 = smov [#allocation2]  }
   0x6   :  { %v27_v11 = vpack.c.b16 %v26_v8, %v25_v7  ;;  %v155_v15 = vld [vmem:[%s364_s3 + $0x48] sm:$0xff]  ;;  %v97_v17 = vld [vmem:[%s364_s3 + $0x20] sm:$0xff]  ;;  %v31_v19 = vld [vmem:[%s363_s2 + $0x10] sm:$0xff]  ;;  %s193_s5 = sshll.u32 %s261_s30, 4  ;;  %s195_s8 = sshll.u32 %s365_s4, 4  ;;  %s194_s5 = int_to_ptr.vmem [resolvable:$true] %s193_s5  ;;  %s196_s8 = int_to_ptr.hbm [resolvable:$true] %s195_s8 }
   0x7   :  { %v177_v16 = vmul.f32 1.442695, %v155_v15  ;;  %v98_v18 = vld [vmem:[%s364_s3 + $0x28] sm:$0xff]  ;;  %v32_v20 = vld [vmem:[%s363_s2 + $0x18] sm:$0xff]  ;;  %v99_v25 = vld [vmem:[%s364_s3 + $0x30] sm:$0xff] }
   0x8   :  { %73 = vmatpush.bf16.msra.mxu0 %v27_v11  ;;  %v34_v21 = vpack.c.bf16 %v32_v20, %v31_v19  ;;  %113 = vperm.xlu2 %215, %v99_v25   ;;  %v100_v29 = vld [vmem:[%s364_s3 + $0x38] sm:$0xff]  ;;  %v154_v36 = vld [vmem:[%s364_s3 + $0x40] sm:$0xff]  ;;  %v92_v43 = vld [vmem:[%s363_s2 + $0x28] sm:$0xff] }
   0x9   :  { %216 = vpow2.f32 %v177_v16  ;;  %v91_v42 = vld [vmem:[%s363_s2 + $0x20] sm:$0xff]  ;;  %v93_v44 = vld [vmem:[%s363_s2 + $0x30] sm:$0xff]  ;;  %v94_v45 = vld [vmem:[%s363_s2 + $0x38] sm:$0xff] }
   0xa   :  { %56 = vperm.xlu0 %213, %v38_v13   ;;  %v95_v48 = vpack.c.bf16 %v92_v43, %v91_v42  ;;  %v96_v49 = vpack.c.bf16 %v94_v45, %v93_v44  ;;  %v152_v2 = vld [vmem:[%s363_s2 + $0x40] sm:$0xff] }
   0xb   :  { %204 = vmatmul.msk.bf16.vlgmr.msra.gmra.mxu0 %vm59_vm0, %v33_v12  ;;  %46 = vperm.xlu1 %214, %v36_v14   ;;  %v153_v5 = vpack.c.bf16 %v152_v2, %v152_v2  ;;  %v179_v6 = vld [vmem:[%s362_s1] sm:$0xff] }
   0xf   :  { %v217_v22 = vpop.eup %216 }
  0x10   :  { %118 = vperm.xlu2 %215, %v100_v29  }
  0x12   :  { %103 = vperm.xlu0 %213, %v97_v17  }
  0x13   :  { %108 = vperm.xlu1 %214, %v98_v18  }
  0x18   :  { %158 = vperm.xlu2 %215, %v154_v36  }
  0x1a   :  { %182 = vperm.xlu0 %213, %v217_v22  }
  0x1b   :  { %205 = vmatmul.msk.bf16.gmra.mxu0 %vm59_vm0, %v34_v21 }
  0x62   :  { %v114_v51 = vpop.permute.xlu2 %113 }
  0x6a   :  { %v119_v56 = vpop.permute.xlu2 %118 }
  0x72   :  { %v159_v8 = vpop.permute.xlu2 %158 }
  0x74   :  { %v52_v27 = vpop.permute.xlu0 %51 }
  0x75   :  { %v42_v26 = vpop.permute.xlu1 %41 }
  0x7c   :  { %v57_v32 = vpop.permute.xlu0 %56 }
  0x7d   :  { %v47_v30 = vpop.permute.xlu1 %46 }
  0x84   :  { %v104_v60 = vpop.permute.xlu0 %103 }
  0x85   :  { %v109_v55 = vpop.permute.xlu1 %108 }
  0x88   :  { %v75_v23 = vpop.f32.mrf.mxu0 }
  0x89   :  { %v76_v37 = vadd.f32 %v75_v23, %v42_v26 }
  0x8c   :  { %v183_v7 = vpop.permute.xlu0 %182 }
  0x8d   :  { %v185_v10 = vmul.f32 %v183_v7, %v179_v6 }
  0x90   :  { %v77_v24 = vpop.f32.mrf.mxu0 }
  0x91   :  { %v78_v34 = vadd.f32 %v77_v24, %v47_v30 }
  0x98   :  { %v80_v28 = vpop.f32.mrf.mxu0 }
  0x99   :  { %v81_v31 = vadd.f32 %v80_v28, %v52_v27 }
  0x9b   :  { %218 = vtanh.f32 %v81_v31 }
  0xa0   :  { %v82_v33 = vpop.f32.mrf.mxu0 }
  0xa1   :  { %v83_v35 = vadd.f32 %v82_v33, %v57_v32  ;;  %v219_v38 = vpop.eup %218 }
  0xa3   :  { %220 = vtanh.f32 %v83_v35 }
  0xa4   :  { %222 = vtanh.f32 %v78_v34 }
  0xa5   :  { %224 = vtanh.f32 %v76_v37 }
  0xa9   :  { %v221_v39 = vpop.eup %220 }
  0xaa   :  { %v90_v40 = vpack.c.bf16 %v221_v39, %v219_v38  ;;  %v223_v41 = vpop.eup %222 }
  0xab   :  { %v225_v46 = vpop.eup %224 }
  0xac   :  { %133 = vmatpush.bf16.msra.mxu1 %v90_v40  ;;  %209 = vmatpush.bf16.msra.mxu3 %v90_v40  ;;  %v89_v47 = vpack.c.bf16 %v223_v41, %v225_v46 }
  0xb0   :  { %134 = vmatpush.bf16.msra.mxu1 %v89_v47  ;;  %210 = vmatpush.bf16.msra.mxu3 %v89_v47 }
  0xb3   :  { %206 = vmatmul.msk.bf16.vlgmr.msra.gmra.mxu1 %vm59_vm0, %v95_v48  ;;  %207 = vmatmul.msk.bf16.vlgmr.msra.gmra.mxu3 %vm59_vm0, %v96_v49 }
 0x130   :  { %v136_v50 = vpop.f32.mrf.mxu1 }
 0x131   :  { %v137_v61 = vadd.f32 %v136_v50, %v104_v60 }
 0x136   :  { %v141_v52 = vpop.f32.mrf.mxu3 }
 0x137   :  { %v142_v53 = vadd.f32 %v141_v52, %v114_v51 }
 0x138   :  { %v138_v54 = vpop.f32.mrf.mxu1 }
 0x139   :  { %v139_v58 = vadd.f32 %v138_v54, %v109_v55  ;;  %226 = vtanh.f32 %v142_v53 }
 0x13e   :  { %v143_v57 = vpop.f32.mrf.mxu3 }
 0x13f   :  { %v144_v59 = vadd.f32 %v143_v57, %v119_v56  ;;  %v227_v62 = vpop.eup %226 }
 0x141   :  { %228 = vtanh.f32 %v144_v59 }
 0x142   :  { %230 = vtanh.f32 %v139_v58 }
 0x143   :  { %232 = vtanh.f32 %v137_v61 }
 0x147   :  { %v229_v63 = vpop.eup %228 }
 0x148   :  { %v151_v0 = vpack.c.bf16 %v229_v63, %v227_v62  ;;  %v231_v1 = vpop.eup %230 }
 0x149   :  { %v233_v3 = vpop.eup %232 }
 0x14a   :  { %170 = vmatpush.bf16.msra.mxu2 %v151_v0  ;;  %v150_v4 = vpack.c.bf16 %v231_v1, %v233_v3 }
 0x14e   :  { %171 = vmatpush.bf16.msra.mxu2 %v150_v4 }
 0x151   :  { %208 = vmatmul.msk.bf16.vlgmr.msra.gmra.mxu2 %vm59_vm0, %v153_v5 }
 0x1d4   :  { %v173_v9 = vpop.f32.mrf.mxu2 }
 0x1d5   :  { %v174_v11 = vadd.f32 %v173_v9, %v159_v8 }
 0x1d7   :  { %v186_v12 = vadd.f32 %v185_v10, %v174_v11 }
 0x1d9   :  { %187 = vst [vmem:[#allocation2] sm:$0xff] %v186_v12 }
 0x1da   :  { %198 = dma.vmem_to_hbm [thread:$0]  %s194_s5, 128, %s196_s8, [#allocation3]  }
 0x1dc   :  { %v175_v13 = vpop.f32.mrf.mxu2 }
 0x1dd   :  { %258 = dma.done.wait [#allocation3], 128  }
 0x1de   :  { %259 = vsyncadd [#allocation3], 4294967168 }
 0x1df   :  { %203 = vsyncpa [#allocation3], 1 }

</bundles_post_ra>
